<compile_context>
chip_gen: v7x
topology: tpu7x:2x2x1
jax: 0.10.0
libtpu: 0.0.40
codegen_flags: <defaults>
</compile_context>

<pallas_src>
import functools

import jax
import jax.numpy as jnp
from jax import lax
from jax.experimental import pallas as pl
from jax.experimental.pallas import tpu as pltpu


def _lstm_kernel(xf_ref, b_ref,              # streamed chunk input + bias
                 wih_hbm, whh_hbm,           # invariant weights (HBM, pl.ANY)
                 out_ref, cN_ref,            # outputs
                 wih_sc, whh_sc,             # single-buffered weight copies
                 xp_sc, h_sc, c_sc,          # chunk gate pre-acts + h/c carry
                 dma_sem):                   # DMA completion semaphores
    """One grid step = one time chunk of TB steps (time-major layout).

    xf_ref : (TB*B, I)   time-major x rows for this chunk (row = t*B + b)
    b_ref  : (1, 4H)     b_ih + b_hh, gate order i|f|o|g (f32)
    wih_hbm: (I, 4H)     W_ih^T in HBM, DMA'd once into wih_sc
    whh_hbm: (H, 4H)     W_hh^T in HBM, DMA'd once into whh_sc
    out_ref: (TB, B, H)  time-major hidden states for this chunk
    cN_ref : (B, H)      final cell state (resident block, flushed at grid end)
    """
    B, H = h_sc.shape
    TB = out_ref.shape[0]

    @pl.when(pl.program_id(0) == 0)
    def _():
        # One-time weight DMA into single-buffered VMEM + zero initial state
        # (torch.nn.LSTM default h0 = c0 = 0 when no initial state is passed).
        cp_ih = pltpu.make_async_copy(wih_hbm, wih_sc, dma_sem.at[0])
        cp_hh = pltpu.make_async_copy(whh_hbm, whh_sc, dma_sem.at[1])
        cp_ih.start()
        cp_hh.start()
        h_sc[...] = jnp.zeros_like(h_sc)
        c_sc[...] = jnp.zeros_like(c_sc)
        cp_ih.wait()
        cp_hh.wait()

    # Fused input projection: ONE (TB*B, I) x (I, 4H) GEMM per chunk, off the
    # serial h_t -> h_{t+1} critical path; result kept in f32 VMEM scratch.
    xp_sc[...] = (
        jnp.dot(xf_ref[...], wih_sc[...], preferred_element_type=jnp.float32)
        + b_ref[...])

    whh = whh_sc[...]  # hoist the invariant recurrent weight load

    def step(tt, carry):
        h, c = carry
        row = pl.multiple_of(tt * B, B)
        xp_t = xp_sc[pl.ds(row, B), :]                                # (B, 4H)
        gates = xp_t + jnp.dot(h.astype(whh.dtype), whh,
                               preferred_element_type=jnp.float32)
        sig = jax.nn.sigmoid(gates[:, :3 * H])        # i|f|o in one EUP pass
        i_g = sig[:, 0 * H:1 * H]
        f_g = sig[:, 1 * H:2 * H]
        o_g = sig[:, 2 * H:3 * H]
        g_g = jnp.tanh(gates[:, 3 * H:])
        c_new = f_g * c + i_g * g_g
        h_new = o_g * jnp.tanh(c_new)
        out_ref[tt] = h_new.astype(out_ref.dtype)     # dense (B, H) slab store
        return h_new, c_new

    h_fin, c_fin = lax.fori_loop(0, TB, step, (h_sc[...], c_sc[...]),
                                 unroll=min(TB, 8))   # bounded unroll: no spill

    h_sc[...] = h_fin
    c_sc[...] = c_fin
    # Written every chunk; the resident (B, H) output block is only flushed to
    # HBM at grid end, so the last chunk's value wins.
    cN_ref[...] = c_fin


@functools.partial(jax.jit, static_argnames=("time_block", "stream_dtype"))
def base_rnn_forward(x, w_ih, w_hh, b_ih, b_hh, time_block=None,
                     stream_dtype=jnp.float32):
    """x: (B, T, I) batch_first input.  Weights in PyTorch nn.LSTM layout:
       w_ih: (4H, I), w_hh: (4H, H), b_ih/b_hh: (4H,)  (gate order i, f, g, o).
       Returns (output (B, T, H), h_n (1, B, H), c_n (1, B, H)).

       stream_dtype controls the dtype of the HBM-streamed operands (x, W, out);
       gate accumulation, the h/c carry and c_n always stay float32."""
    B, T, I = x.shape
    H = w_hh.shape[1]
    sbytes = jnp.dtype(stream_dtype).itemsize

    # ---- VMEM-aware time-block selection --------------------------------
    def chunk_vmem_bytes(tb):
        return (2 * tb * B * I * sbytes          # streamed x chunk (double-buf)
                + 2 * tb * B * H * sbytes        # streamed out chunk (double-buf)
                + tb * B * 4 * H * 4             # f32 gate-preactivation scratch
                + (I + H) * 4 * H * sbytes       # single-buffered W_ih^T / W_hh^T
                + 2 * 4 * H * 4                  # bias block
                + 4 * B * H * 4)                 # h/c carry + resident c_n

    VMEM_BUDGET = 40 * 1024 * 1024   # conservative: fits v7x's 64 MiB VMEM
    if time_block is None:
        # Largest divisor of T whose chunk fits the budget and keeps the
        # streamed blocks sublane-aligned ((TB*B) % 8 == 0, unless TB == T).
        cands = [tb for tb in range(T, 0, -1)
                 if T % tb == 0 and ((tb * B) % 8 == 0 or tb == T)]
        fitting = [tb for tb in cands if chunk_vmem_bytes(tb) <= VMEM_BUDGET]
        time_block = fitting[0] if fitting else cands[-1]
    TB = time_block
    assert T % TB == 0 and ((TB * B) % 8 == 0 or TB == T), (T, TB, B)
    vmem_limit = int(min(64 * 2 ** 20,
                         max(2 * chunk_vmem_bytes(TB), 16 * 2 ** 20)))

    # ---- weight / input preprocessing -----------------------------------
    x = x.astype(jnp.float32)        # input_dropout (eval mode) == identity

    def reorder(w):  # PyTorch i|f|g|o  ->  i|f|o|g  along the 4H axis
        w4 = w.reshape(4, H, *w.shape[1:])
        return jnp.concatenate([w4[0], w4[1], w4[3], w4[2]], axis=0)

    w_ih_r = reorder(w_ih.astype(jnp.float32))                 # (4H, I)
    w_hh_r = reorder(w_hh.astype(jnp.float32))                 # (4H, H)
    b = reorder((b_ih + b_hh).astype(jnp.float32)).reshape(1, 4 * H)

    wih_t = w_ih_r.T.astype(stream_dtype)                      # (I, 4H)
    whh_t = w_hh_r.T.astype(stream_dtype)                      # (H, 4H)
    # Time-major, flattened: row index = t*B + b, so each chunk is one dense
    # (TB*B, I) GEMM operand and each step reads a dense (B, 4H) slab.
    xf = jnp.transpose(x, (1, 0, 2)).reshape(T * B, I).astype(stream_dtype)

    out_tm, c_n = pl.pallas_call(
        _lstm_kernel,
        out_shape=(
            jax.ShapeDtypeStruct((T, B, H), stream_dtype),     # time-major out
            jax.ShapeDtypeStruct((B, H), jnp.float32),         # c_n
        ),
        grid_spec=pltpu.PrefetchScalarGridSpec(
            num_scalar_prefetch=0,
            grid=(T // TB,),
            in_specs=[
                pl.BlockSpec((TB * B, I), lambda t: (t, 0)),   # x chunk
                pl.BlockSpec((1, 4 * H), lambda t: (0, 0)),    # bias
                pl.BlockSpec(memory_space=pl.ANY),             # W_ih^T (HBM)
                pl.BlockSpec(memory_space=pl.ANY),             # W_hh^T (HBM)
            ],
            out_specs=[
                pl.BlockSpec((TB, B, H), lambda t: (t, 0, 0)), # time-major out
                pl.BlockSpec((B, H), lambda t: (0, 0)),        # resident c_n
            ],
            scratch_shapes=[
                pltpu.VMEM((I, 4 * H), stream_dtype),          # W_ih^T (1 buf)
                pltpu.VMEM((H, 4 * H), stream_dtype),          # W_hh^T (1 buf)
                pltpu.VMEM((TB * B, 4 * H), jnp.float32),      # chunk gate pre-acts
                pltpu.VMEM((B, H), jnp.float32),               # h carry
                pltpu.VMEM((B, H), jnp.float32),               # c carry
                pltpu.SemaphoreType.DMA((2,)),                 # weight-DMA sems
            ],
        ),
        compiler_params=pltpu.CompilerParams(
            dimension_semantics=("arbitrary",),   # time recurrence is sequential
            vmem_limit_bytes=vmem_limit,
        ),
    )(xf, b, wih_t, whh_t)

    out = jnp.transpose(out_tm, (1, 0, 2))        # back to batch-first (B, T, H)
    h_n = out_tm[T - 1][None]                     # (1, B, H) == last hidden
    return out, h_n, c_n[None]


def _reference_lstm(x, w_ih, w_hh, b_ih, b_hh):
    """Pure-JAX reference matching torch.nn.LSTM (1 layer, unidirectional)."""
    B, T, I = x.shape
    H = w_hh.shape[1]
    b = b_ih + b_hh

    def step(carry, x_t):
        h, c = carry
        gates = x_t @ w_ih.T + h @ w_hh.T + b
        i = jax.nn.sigmoid(gates[:, 0 * H:1 * H])
        f = jax.nn.sigmoid(gates[:, 1 * H:2 * H])
        g = jnp.tanh(gates[:, 2 * H:3 * H])
        o = jax.nn.sigmoid(gates[:, 3 * H:4 * H])
        c = f * c + i * g
        h = o * jnp.tanh(c)
        return (h, c), h

    init = (jnp.zeros((B, H), jnp.float32), jnp.zeros((B, H), jnp.float32))
    (h_n, c_n), ys = jax.lax.scan(step, init, jnp.transpose(x, (1, 0, 2)))
    return jnp.transpose(ys, (1, 0, 2)), h_n[None], c_n[None]


if __name__ == "__main__":
    # BaseRNN(vocab_size=100, input_size=16, hidden_size=32, input_dropout_p=0.0,
    #         dropout_p=0.0, n_layers=1, rnn_cell='lstm', bidirectional=False)
    B, T, I, H = 2, 8, 16, 32

    key = jax.random.PRNGKey(0)
    k_x, k_wih, k_whh, k_bih, k_bhh = jax.random.split(key, 5)

    # PyTorch init: uniform(-1/sqrt(H), 1/sqrt(H))
    bound = 1.0 / jnp.sqrt(jnp.float32(H))
    w_ih = jax.random.uniform(k_wih, (4 * H, I), jnp.float32, -bound, bound)
    w_hh = jax.random.uniform(k_whh, (4 * H, H), jnp.float32, -bound, bound)
    b_ih = jax.random.uniform(k_bih, (4 * H,), jnp.float32, -bound, bound)
    b_hh = jax.random.uniform(k_bhh, (4 * H,), jnp.float32, -bound, bound)
    # BaseRNN.__init__: forget-gate bias slice [H:2H] filled with 1.0
    b_ih = b_ih.at[H:2 * H].set(1.0)
    b_hh = b_hh.at[H:2 * H].set(1.0)

    x = jax.random.normal(k_x, (B, T, I), jnp.float32)

    # f32 streaming: exact parity with torch.nn.LSTM semantics.
    out, h_n, c_n = base_rnn_forward(x, w_ih, w_hh, b_ih, b_hh)
    jax.block_until_ready((out, h_n, c_n))

    ref_out, ref_h, ref_c = _reference_lstm(x, w_ih, w_hh, b_ih, b_hh)
    assert jnp.allclose(out, ref_out, atol=1e-5, rtol=1e-5)
    assert jnp.allclose(h_n, ref_h, atol=1e-5, rtol=1e-5)
    assert jnp.allclose(c_n, ref_c, atol=1e-5, rtol=1e-5)

    # bf16 streaming (halved HBM traffic); f32 accumulation keeps the error
    # modest, so only a loose sanity check here.
    out_bf, h_bf, c_bf = base_rnn_forward(x, w_ih, w_hh, b_ih, b_hh,
                                          stream_dtype=jnp.bfloat16)
    jax.block_until_ready((out_bf, h_bf, c_bf))
    assert jnp.max(jnp.abs(out_bf.astype(jnp.float32) - ref_out)) < 0.1
    assert jnp.max(jnp.abs(c_bf.astype(jnp.float32) - ref_c)) < 0.1

    print("KERNEL_OK")
</pallas_src>

<mosaic_0001>
module attributes {stable_mosaic.version = 11 : i64} {
  func.func @_lstm_kernel(%arg0: i32, %arg1: memref<16x16xf32, #tpu.memory_space<vmem>>, %arg2: memref<1x128xf32, #tpu.memory_space<vmem>>, %arg3: memref<16x128xf32, #tpu.memory_space<any>>, %arg4: memref<32x128xf32, #tpu.memory_space<any>>, %arg5: memref<8x2x32xf32, #tpu.memory_space<vmem>>, %arg6: memref<2x32xf32, #tpu.memory_space<vmem>>, %arg7: memref<16x128xf32, #tpu.memory_space<vmem>>, %arg8: memref<32x128xf32, #tpu.memory_space<vmem>>, %arg9: memref<16x128xf32, #tpu.memory_space<vmem>>, %arg10: memref<2x32xf32, #tpu.memory_space<vmem>>, %arg11: memref<2x32xf32, #tpu.memory_space<vmem>>, %arg12: memref<2x!tpu.dma_semaphore, #tpu.memory_space<semaphore_mem>>) attributes {dimension_semantics = [#tpu.dimension_semantics<arbitrary>], iteration_bounds = array<i64: 1>, scalar_prefetch = 0 : i64, scratch_operands = 6 : i64, tpu.core_type = #tpu.core_type<tc>, window_params = [{transform_indices = @transform_0, window_bounds = array<i64: 16, 16>}, {pipeline_mode = #tpu.pipeline_mode<synchronous>, transform_indices = @transform_1, window_bounds = array<i64: 1, 128>}, {}, {}, {transform_indices = @transform_4, window_bounds = array<i64: 8, 2, 32>}, {pipeline_mode = #tpu.pipeline_mode<synchronous>, transform_indices = @transform_5, window_bounds = array<i64: 2, 32>}]} {
    %c0_i32 = arith.constant 0 : i32
    %0 = arith.cmpi eq, %arg0, %c0_i32 : i32
    %1 = arith.extui %0 : i1 to i32
    %c0_i32_0 = arith.constant 0 : i32
    %2 = arith.cmpi ne, %1, %c0_i32_0 : i32
    scf.if %2 {
      %c0_i32_69 = arith.constant 0 : i32
      %224 = tpu.memref_slice %arg12[%c0_i32_69] : memref<2x!tpu.dma_semaphore, #tpu.memory_space<semaphore_mem>> -> memref<1x!tpu.dma_semaphore, #tpu.memory_space<semaphore_mem>>
      %225 = tpu.memref_squeeze %224 : memref<1x!tpu.dma_semaphore, #tpu.memory_space<semaphore_mem>> -> memref<!tpu.dma_semaphore, #tpu.memory_space<semaphore_mem>>
      tpu.enqueue_dma source(%arg3 : memref<16x128xf32, #tpu.memory_space<any>>) target(%arg7 : memref<16x128xf32, #tpu.memory_space<vmem>>) target_semaphore(%225 : memref<!tpu.dma_semaphore, #tpu.memory_space<semaphore_mem>>)
      %c1_i32_70 = arith.constant 1 : i32
      %226 = tpu.memref_slice %arg12[%c1_i32_70] : memref<2x!tpu.dma_semaphore, #tpu.memory_space<semaphore_mem>> -> memref<1x!tpu.dma_semaphore, #tpu.memory_space<semaphore_mem>>
      %227 = tpu.memref_squeeze %226 : memref<1x!tpu.dma_semaphore, #tpu.memory_space<semaphore_mem>> -> memref<!tpu.dma_semaphore, #tpu.memory_space<semaphore_mem>>
      tpu.enqueue_dma source(%arg4 : memref<32x128xf32, #tpu.memory_space<any>>) target(%arg8 : memref<32x128xf32, #tpu.memory_space<vmem>>) target_semaphore(%227 : memref<!tpu.dma_semaphore, #tpu.memory_space<semaphore_mem>>)
      %cst_71 = arith.constant 0.000000e+00 : f32
      %228 = vector.broadcast %cst_71 : f32 to vector<2x32xf32>
      %c0_72 = arith.constant 0 : index
      %c0_73 = arith.constant 0 : index
      %229 = vector.load %arg10[%c0_72, %c0_73] : memref<2x32xf32, #tpu.memory_space<vmem>>, vector<2x32xf32>
      tpu.vector_store %arg10[%c0_72, %c0_73], %228 {strides = array<i32>} : memref<2x32xf32, #tpu.memory_space<vmem>>, vector<2x32xf32>,
      %cst_74 = arith.constant 0.000000e+00 : f32
      %230 = vector.broadcast %cst_74 : f32 to vector<2x32xf32>
      %c0_75 = arith.constant 0 : index
      %c0_76 = arith.constant 0 : index
      %231 = vector.load %arg11[%c0_75, %c0_76] : memref<2x32xf32, #tpu.memory_space<vmem>>, vector<2x32xf32>
      tpu.vector_store %arg11[%c0_75, %c0_76], %230 {strides = array<i32>} : memref<2x32xf32, #tpu.memory_space<vmem>>, vector<2x32xf32>,
      %c0_i32_77 = arith.constant 0 : i32
      %232 = tpu.memref_slice %arg12[%c0_i32_77] : memref<2x!tpu.dma_semaphore, #tpu.memory_space<semaphore_mem>> -> memref<1x!tpu.dma_semaphore, #tpu.memory_space<semaphore_mem>>
      %233 = tpu.memref_squeeze %232 : memref<1x!tpu.dma_semaphore, #tpu.memory_space<semaphore_mem>> -> memref<!tpu.dma_semaphore, #tpu.memory_space<semaphore_mem>>
      tpu.wait_dma2 semaphore(%233 : memref<!tpu.dma_semaphore, #tpu.memory_space<semaphore_mem>>) src(%arg3 : memref<16x128xf32, #tpu.memory_space<any>>) dst(%arg7 : memref<16x128xf32, #tpu.memory_space<vmem>>)
      %c1_i32_78 = arith.constant 1 : i32
      %234 = tpu.memref_slice %arg12[%c1_i32_78] : memref<2x!tpu.dma_semaphore, #tpu.memory_space<semaphore_mem>> -> memref<1x!tpu.dma_semaphore, #tpu.memory_space<semaphore_mem>>
      %235 = tpu.memref_squeeze %234 : memref<1x!tpu.dma_semaphore, #tpu.memory_space<semaphore_mem>> -> memref<!tpu.dma_semaphore, #tpu.memory_space<semaphore_mem>>
      tpu.wait_dma2 semaphore(%235 : memref<!tpu.dma_semaphore, #tpu.memory_space<semaphore_mem>>) src(%arg4 : memref<32x128xf32, #tpu.memory_space<any>>) dst(%arg8 : memref<32x128xf32, #tpu.memory_space<vmem>>)
    } else {
    }
    %c0 = arith.constant 0 : index
    %c0_1 = arith.constant 0 : index
    %3 = vector.load %arg1[%c0, %c0_1] : memref<16x16xf32, #tpu.memory_space<vmem>>, vector<16x16xf32>
    %c0_2 = arith.constant 0 : index
    %c0_3 = arith.constant 0 : index
    %4 = vector.load %arg7[%c0_2, %c0_3] : memref<16x128xf32, #tpu.memory_space<vmem>>, vector<16x128xf32>
    %cst = arith.constant dense<0.000000e+00> : vector<16x128xf32>
    %5 = tpu.matmul %3, %4, %cst {dimension_numbers = #tpu.dot_dimension_numbers<[1], [0], [0], [1], [0, 0, 1, 1], [], []>} : vector<16x16xf32>, vector<16x128xf32>, vector<16x128xf32> -> vector<16x128xf32>
    %c0_4 = arith.constant 0 : index
    %c0_5 = arith.constant 0 : index
    %6 = vector.load %arg2[%c0_4, %c0_5] : memref<1x128xf32, #tpu.memory_space<vmem>>, vector<1x128xf32>
    %7 = vector.broadcast %6 : vector<1x128xf32> to vector<16x128xf32>
    %8 = arith.addf %5, %7 : vector<16x128xf32>
    %c0_6 = arith.constant 0 : index
    %c0_7 = arith.constant 0 : index
    %9 = vector.load %arg9[%c0_6, %c0_7] : memref<16x128xf32, #tpu.memory_space<vmem>>, vector<16x128xf32>
    tpu.vector_store %arg9[%c0_6, %c0_7], %8 {strides = array<i32>} : memref<16x128xf32, #tpu.memory_space<vmem>>, vector<16x128xf32>,
    %c0_8 = arith.constant 0 : index
    %c0_9 = arith.constant 0 : index
    %10 = vector.load %arg8[%c0_8, %c0_9] : memref<32x128xf32, #tpu.memory_space<vmem>>, vector<32x128xf32>
    %c0_10 = arith.constant 0 : index
    %c0_11 = arith.constant 0 : index
    %11 = vector.load %arg10[%c0_10, %c0_11] : memref<2x32xf32, #tpu.memory_space<vmem>>, vector<2x32xf32>
    %c0_12 = arith.constant 0 : index
    %c0_13 = arith.constant 0 : index
    %12 = vector.load %arg11[%c0_12, %c0_13] : memref<2x32xf32, #tpu.memory_space<vmem>>, vector<2x32xf32>
    %c0_i32_14 = arith.constant 0 : i32
    %c2_i32 = arith.constant 2 : i32
    %13 = arith.muli %c0_i32_14, %c2_i32 : i32
    %14 = tpu.assume_multiple %13, 2 : i32
    %15 = arith.index_cast %14 : i32 to index
    %c0_15 = arith.constant 0 : index
    %16 = vector.load %arg9[%15, %c0_15] : memref<16x128xf32, #tpu.memory_space<vmem>>, vector<2x128xf32>
    %cst_16 = arith.constant dense<0.000000e+00> : vector<2x128xf32>
    %17 = tpu.matmul %11, %10, %cst_16 {dimension_numbers = #tpu.dot_dimension_numbers<[1], [0], [0], [1], [0, 0, 1, 1], [], []>} : vector<2x32xf32>, vector<32x128xf32>, vector<2x128xf32> -> vector<2x128xf32>
    %18 = arith.addf %16, %17 : vector<2x128xf32>
    %19 = vector.extract_strided_slice %18 {offsets = [0, 0], sizes = [2, 96], strides = [1, 1]} : vector<2x128xf32> to vector<2x96xf32>
    %20 = arith.negf %19 : vector<2x96xf32>
    %21 = math.exp %20 : vector<2x96xf32>
    %cst_17 = arith.constant 1.000000e+00 : f32
    %22 = vector.broadcast %cst_17 : f32 to vector<2x96xf32>
    %23 = arith.addf %22, %21 : vector<2x96xf32>
    %24 = arith.divf %22, %23 : vector<2x96xf32>
    %25 = vector.extract_strided_slice %24 {offsets = [0, 0], sizes = [2, 32], strides = [1, 1]} : vector<2x96xf32> to vector<2x32xf32>
    %26 = vector.extract_strided_slice %24 {offsets = [0, 32], sizes = [2, 32], strides = [1, 1]} : vector<2x96xf32> to vector<2x32xf32>
    %27 = vector.extract_strided_slice %24 {offsets = [0, 64], sizes = [2, 32], strides = [1, 1]} : vector<2x96xf32> to vector<2x32xf32>
    %28 = vector.extract_strided_slice %18 {offsets = [0, 96], sizes = [2, 32], strides = [1, 1]} : vector<2x128xf32> to vector<2x32xf32>
    %29 = math.tanh %28 : vector<2x32xf32>
    %30 = arith.mulf %26, %12 : vector<2x32xf32>
    %31 = arith.mulf %25, %29 : vector<2x32xf32>
    %32 = arith.addf %30, %31 : vector<2x32xf32>
    %33 = math.tanh %32 : vector<2x32xf32>
    %34 = arith.mulf %27, %33 : vector<2x32xf32>
    %35 = arith.index_cast %c0_i32_14 : i32 to index
    %c0_18 = arith.constant 0 : index
    %c0_19 = arith.constant 0 : index
    %36 = vector.load %arg5[%35, %c0_18, %c0_19] : memref<8x2x32xf32, #tpu.memory_space<vmem>>, vector<1x2x32xf32>
    %37 = vector.shape_cast %36 : vector<1x2x32xf32> to vector<2x32xf32>
    %38 = vector.shape_cast %34 : vector<2x32xf32> to vector<1x2x32xf32>
    tpu.vector_store %arg5[%35, %c0_18, %c0_19], %38 {strides = array<i32>} : memref<8x2x32xf32, #tpu.memory_space<vmem>>, vector<1x2x32xf32>,
    %c1_i32 = arith.constant 1 : i32
    %c2_i32_20 = arith.constant 2 : i32
    %39 = arith.muli %c1_i32, %c2_i32_20 : i32
    %40 = tpu.assume_multiple %39, 2 : i32
    %41 = arith.index_cast %40 : i32 to index
    %c0_21 = arith.constant 0 : index
    %42 = vector.load %arg9[%41, %c0_21] : memref<16x128xf32, #tpu.memory_space<vmem>>, vector<2x128xf32>
    %cst_22 = arith.constant dense<0.000000e+00> : vector<2x128xf32>
    %43 = tpu.matmul %34, %10, %cst_22 {dimension_numbers = #tpu.dot_dimension_numbers<[1], [0], [0], [1], [0, 0, 1, 1], [], []>} : vector<2x32xf32>, vector<32x128xf32>, vector<2x128xf32> -> vector<2x128xf32>
    %44 = arith.addf %42, %43 : vector<2x128xf32>
    %45 = vector.extract_strided_slice %44 {offsets = [0, 0], sizes = [2, 96], strides = [1, 1]} : vector<2x128xf32> to vector<2x96xf32>
    %46 = arith.negf %45 : vector<2x96xf32>
    %47 = math.exp %46 : vector<2x96xf32>
    %cst_23 = arith.constant 1.000000e+00 : f32
    %48 = vector.broadcast %cst_23 : f32 to vector<2x96xf32>
    %49 = arith.addf %48, %47 : vector<2x96xf32>
    %50 = arith.divf %48, %49 : vector<2x96xf32>
    %51 = vector.extract_strided_slice %50 {offsets = [0, 0], sizes = [2, 32], strides = [1, 1]} : vector<2x96xf32> to vector<2x32xf32>
    %52 = vector.extract_strided_slice %50 {offsets = [0, 32], sizes = [2, 32], strides = [1, 1]} : vector<2x96xf32> to vector<2x32xf32>
    %53 = vector.extract_strided_slice %50 {offsets = [0, 64], sizes = [2, 32], strides = [1, 1]} : vector<2x96xf32> to vector<2x32xf32>
    %54 = vector.extract_strided_slice %44 {offsets = [0, 96], sizes = [2, 32], strides = [1, 1]} : vector<2x128xf32> to vector<2x32xf32>
    %55 = math.tanh %54 : vector<2x32xf32>
    %56 = arith.mulf %52, %32 : vector<2x32xf32>
    %57 = arith.mulf %51, %55 : vector<2x32xf32>
    %58 = arith.addf %56, %57 : vector<2x32xf32>
    %59 = math.tanh %58 : vector<2x32xf32>
    %60 = arith.mulf %53, %59 : vector<2x32xf32>
    %61 = arith.index_cast %c1_i32 : i32 to index
    %c0_24 = arith.constant 0 : index
    %c0_25 = arith.constant 0 : index
    %62 = vector.load %arg5[%61, %c0_24, %c0_25] : memref<8x2x32xf32, #tpu.memory_space<vmem>>, vector<1x2x32xf32>
    %63 = vector.shape_cast %62 : vector<1x2x32xf32> to vector<2x32xf32>
    %64 = vector.shape_cast %60 : vector<2x32xf32> to vector<1x2x32xf32>
    tpu.vector_store %arg5[%61, %c0_24, %c0_25], %64 {strides = array<i32>} : memref<8x2x32xf32, #tpu.memory_space<vmem>>, vector<1x2x32xf32>,
    %c2_i32_26 = arith.constant 2 : i32
    %c2_i32_27 = arith.constant 2 : i32
    %65 = arith.muli %c2_i32_26, %c2_i32_27 : i32
    %66 = tpu.assume_multiple %65, 2 : i32
    %67 = arith.index_cast %66 : i32 to index
    %c0_28 = arith.constant 0 : index
    %68 = vector.load %arg9[%67, %c0_28] : memref<16x128xf32, #tpu.memory_space<vmem>>, vector<2x128xf32>
    %cst_29 = arith.constant dense<0.000000e+00> : vector<2x128xf32>
    %69 = tpu.matmul %60, %10, %cst_29 {dimension_numbers = #tpu.dot_dimension_numbers<[1], [0], [0], [1], [0, 0, 1, 1], [], []>} : vector<2x32xf32>, vector<32x128xf32>, vector<2x128xf32> -> vector<2x128xf32>
    %70 = arith.addf %68, %69 : vector<2x128xf32>
    %71 = vector.extract_strided_slice %70 {offsets = [0, 0], sizes = [2, 96], strides = [1, 1]} : vector<2x128xf32> to vector<2x96xf32>
    %72 = arith.negf %71 : vector<2x96xf32>
    %73 = math.exp %72 : vector<2x96xf32>
    %cst_30 = arith.constant 1.000000e+00 : f32
    %74 = vector.broadcast %cst_30 : f32 to vector<2x96xf32>
    %75 = arith.addf %74, %73 : vector<2x96xf32>
    %76 = arith.divf %74, %75 : vector<2x96xf32>
    %77 = vector.extract_strided_slice %76 {offsets = [0, 0], sizes = [2, 32], strides = [1, 1]} : vector<2x96xf32> to vector<2x32xf32>
    %78 = vector.extract_strided_slice %76 {offsets = [0, 32], sizes = [2, 32], strides = [1, 1]} : vector<2x96xf32> to vector<2x32xf32>
    %79 = vector.extract_strided_slice %76 {offsets = [0, 64], sizes = [2, 32], strides = [1, 1]} : vector<2x96xf32> to vector<2x32xf32>
    %80 = vector.extract_strided_slice %70 {offsets = [0, 96], sizes = [2, 32], strides = [1, 1]} : vector<2x128xf32> to vector<2x32xf32>
    %81 = math.tanh %80 : vector<2x32xf32>
    %82 = arith.mulf %78, %58 : vector<2x32xf32>
    %83 = arith.mulf %77, %81 : vector<2x32xf32>
    %84 = arith.addf %82, %83 : vector<2x32xf32>
    %85 = math.tanh %84 : vector<2x32xf32>
    %86 = arith.mulf %79, %85 : vector<2x32xf32>
    %87 = arith.index_cast %c2_i32_26 : i32 to index
    %c0_31 = arith.constant 0 : index
    %c0_32 = arith.constant 0 : index
    %88 = vector.load %arg5[%87, %c0_31, %c0_32] : memref<8x2x32xf32, #tpu.memory_space<vmem>>, vector<1x2x32xf32>
    %89 = vector.shape_cast %88 : vector<1x2x32xf32> to vector<2x32xf32>
    %90 = vector.shape_cast %86 : vector<2x32xf32> to vector<1x2x32xf32>
    tpu.vector_store %arg5[%87, %c0_31, %c0_32], %90 {strides = array<i32>} : memref<8x2x32xf32, #tpu.memory_space<vmem>>, vector<1x2x32xf32>,
    %c3_i32 = arith.constant 3 : i32
    %c2_i32_33 = arith.constant 2 : i32
    %91 = arith.muli %c3_i32, %c2_i32_33 : i32
    %92 = tpu.assume_multiple %91, 2 : i32
    %93 = arith.index_cast %92 : i32 to index
    %c0_34 = arith.constant 0 : index
    %94 = vector.load %arg9[%93, %c0_34] : memref<16x128xf32, #tpu.memory_space<vmem>>, vector<2x128xf32>
    %cst_35 = arith.constant dense<0.000000e+00> : vector<2x128xf32>
    %95 = tpu.matmul %86, %10, %cst_35 {dimension_numbers = #tpu.dot_dimension_numbers<[1], [0], [0], [1], [0, 0, 1, 1], [], []>} : vector<2x32xf32>, vector<32x128xf32>, vector<2x128xf32> -> vector<2x128xf32>
    %96 = arith.addf %94, %95 : vector<2x128xf32>
    %97 = vector.extract_strided_slice %96 {offsets = [0, 0], sizes = [2, 96], strides = [1, 1]} : vector<2x128xf32> to vector<2x96xf32>
    %98 = arith.negf %97 : vector<2x96xf32>
    %99 = math.exp %98 : vector<2x96xf32>
    %cst_36 = arith.constant 1.000000e+00 : f32
    %100 = vector.broadcast %cst_36 : f32 to vector<2x96xf32>
    %101 = arith.addf %100, %99 : vector<2x96xf32>
    %102 = arith.divf %100, %101 : vector<2x96xf32>
    %103 = vector.extract_strided_slice %102 {offsets = [0, 0], sizes = [2, 32], strides = [1, 1]} : vector<2x96xf32> to vector<2x32xf32>
    %104 = vector.extract_strided_slice %102 {offsets = [0, 32], sizes = [2, 32], strides = [1, 1]} : vector<2x96xf32> to vector<2x32xf32>
    %105 = vector.extract_strided_slice %102 {offsets = [0, 64], sizes = [2, 32], strides = [1, 1]} : vector<2x96xf32> to vector<2x32xf32>
    %106 = vector.extract_strided_slice %96 {offsets = [0, 96], sizes = [2, 32], strides = [1, 1]} : vector<2x128xf32> to vector<2x32xf32>
    %107 = math.tanh %106 : vector<2x32xf32>
    %108 = arith.mulf %104, %84 : vector<2x32xf32>
    %109 = arith.mulf %103, %107 : vector<2x32xf32>
    %110 = arith.addf %108, %109 : vector<2x32xf32>
    %111 = math.tanh %110 : vector<2x32xf32>
    %112 = arith.mulf %105, %111 : vector<2x32xf32>
    %113 = arith.index_cast %c3_i32 : i32 to index
    %c0_37 = arith.constant 0 : index
    %c0_38 = arith.constant 0 : index
    %114 = vector.load %arg5[%113, %c0_37, %c0_38] : memref<8x2x32xf32, #tpu.memory_space<vmem>>, vector<1x2x32xf32>
    %115 = vector.shape_cast %114 : vector<1x2x32xf32> to vector<2x32xf32>
    %116 = vector.shape_cast %112 : vector<2x32xf32> to vector<1x2x32xf32>
    tpu.vector_store %arg5[%113, %c0_37, %c0_38], %116 {strides = array<i32>} : memref<8x2x32xf32, #tpu.memory_space<vmem>>, vector<1x2x32xf32>,
    %c4_i32 = arith.constant 4 : i32
    %c2_i32_39 = arith.constant 2 : i32
    %117 = arith.muli %c4_i32, %c2_i32_39 : i32
    %118 = tpu.assume_multiple %117, 2 : i32
    %119 = arith.index_cast %118 : i32 to index
    %c0_40 = arith.constant 0 : index
    %120 = vector.load %arg9[%119, %c0_40] : memref<16x128xf32, #tpu.memory_space<vmem>>, vector<2x128xf32>
    %cst_41 = arith.constant dense<0.000000e+00> : vector<2x128xf32>
    %121 = tpu.matmul %112, %10, %cst_41 {dimension_numbers = #tpu.dot_dimension_numbers<[1], [0], [0], [1], [0, 0, 1, 1], [], []>} : vector<2x32xf32>, vector<32x128xf32>, vector<2x128xf32> -> vector<2x128xf32>
    %122 = arith.addf %120, %121 : vector<2x128xf32>
    %123 = vector.extract_strided_slice %122 {offsets = [0, 0], sizes = [2, 96], strides = [1, 1]} : vector<2x128xf32> to vector<2x96xf32>
    %124 = arith.negf %123 : vector<2x96xf32>
    %125 = math.exp %124 : vector<2x96xf32>
    %cst_42 = arith.constant 1.000000e+00 : f32
    %126 = vector.broadcast %cst_42 : f32 to vector<2x96xf32>
    %127 = arith.addf %126, %125 : vector<2x96xf32>
    %128 = arith.divf %126, %127 : vector<2x96xf32>
    %129 = vector.extract_strided_slice %128 {offsets = [0, 0], sizes = [2, 32], strides = [1, 1]} : vector<2x96xf32> to vector<2x32xf32>
    %130 = vector.extract_strided_slice %128 {offsets = [0, 32], sizes = [2, 32], strides = [1, 1]} : vector<2x96xf32> to vector<2x32xf32>
    %131 = vector.extract_strided_slice %128 {offsets = [0, 64], sizes = [2, 32], strides = [1, 1]} : vector<2x96xf32> to vector<2x32xf32>
    %132 = vector.extract_strided_slice %122 {offsets = [0, 96], sizes = [2, 32], strides = [1, 1]} : vector<2x128xf32> to vector<2x32xf32>
    %133 = math.tanh %132 : vector<2x32xf32>
    %134 = arith.mulf %130, %110 : vector<2x32xf32>
    %135 = arith.mulf %129, %133 : vector<2x32xf32>
    %136 = arith.addf %134, %135 : vector<2x32xf32>
    %137 = math.tanh %136 : vector<2x32xf32>
    %138 = arith.mulf %131, %137 : vector<2x32xf32>
    %139 = arith.index_cast %c4_i32 : i32 to index
    %c0_43 = arith.constant 0 : index
    %c0_44 = arith.constant 0 : index
    %140 = vector.load %arg5[%139, %c0_43, %c0_44] : memref<8x2x32xf32, #tpu.memory_space<vmem>>, vector<1x2x32xf32>
    %141 = vector.shape_cast %140 : vector<1x2x32xf32> to vector<2x32xf32>
    %142 = vector.shape_cast %138 : vector<2x32xf32> to vector<1x2x32xf32>
    tpu.vector_store %arg5[%139, %c0_43, %c0_44], %142 {strides = array<i32>} : memref<8x2x32xf32, #tpu.memory_space<vmem>>, vector<1x2x32xf32>,
    %c5_i32 = arith.constant 5 : i32
    %c2_i32_45 = arith.constant 2 : i32
    %143 = arith.muli %c5_i32, %c2_i32_45 : i32
    %144 = tpu.assume_multiple %143, 2 : i32
    %145 = arith.index_cast %144 : i32 to index
    %c0_46 = arith.constant 0 : index
    %146 = vector.load %arg9[%145, %c0_46] : memref<16x128xf32, #tpu.memory_space<vmem>>, vector<2x128xf32>
    %cst_47 = arith.constant dense<0.000000e+00> : vector<2x128xf32>
    %147 = tpu.matmul %138, %10, %cst_47 {dimension_numbers = #tpu.dot_dimension_numbers<[1], [0], [0], [1], [0, 0, 1, 1], [], []>} : vector<2x32xf32>, vector<32x128xf32>, vector<2x128xf32> -> vector<2x128xf32>
    %148 = arith.addf %146, %147 : vector<2x128xf32>
    %149 = vector.extract_strided_slice %148 {offsets = [0, 0], sizes = [2, 96], strides = [1, 1]} : vector<2x128xf32> to vector<2x96xf32>
    %150 = arith.negf %149 : vector<2x96xf32>
    %151 = math.exp %150 : vector<2x96xf32>
    %cst_48 = arith.constant 1.000000e+00 : f32
    %152 = vector.broadcast %cst_48 : f32 to vector<2x96xf32>
    %153 = arith.addf %152, %151 : vector<2x96xf32>
    %154 = arith.divf %152, %153 : vector<2x96xf32>
    %155 = vector.extract_strided_slice %154 {offsets = [0, 0], sizes = [2, 32], strides = [1, 1]} : vector<2x96xf32> to vector<2x32xf32>
    %156 = vector.extract_strided_slice %154 {offsets = [0, 32], sizes = [2, 32], strides = [1, 1]} : vector<2x96xf32> to vector<2x32xf32>
    %157 = vector.extract_strided_slice %154 {offsets = [0, 64], sizes = [2, 32], strides = [1, 1]} : vector<2x96xf32> to vector<2x32xf32>
    %158 = vector.extract_strided_slice %148 {offsets = [0, 96], sizes = [2, 32], strides = [1, 1]} : vector<2x128xf32> to vector<2x32xf32>
    %159 = math.tanh %158 : vector<2x32xf32>
    %160 = arith.mulf %156, %136 : vector<2x32xf32>
    %161 = arith.mulf %155, %159 : vector<2x32xf32>
    %162 = arith.addf %160, %161 : vector<2x32xf32>
    %163 = math.tanh %162 : vector<2x32xf32>
    %164 = arith.mulf %157, %163 : vector<2x32xf32>
    %165 = arith.index_cast %c5_i32 : i32 to index
    %c0_49 = arith.constant 0 : index
    %c0_50 = arith.constant 0 : index
    %166 = vector.load %arg5[%165, %c0_49, %c0_50] : memref<8x2x32xf32, #tpu.memory_space<vmem>>, vector<1x2x32xf32>
    %167 = vector.shape_cast %166 : vector<1x2x32xf32> to vector<2x32xf32>
    %168 = vector.shape_cast %164 : vector<2x32xf32> to vector<1x2x32xf32>
    tpu.vector_store %arg5[%165, %c0_49, %c0_50], %168 {strides = array<i32>} : memref<8x2x32xf32, #tpu.memory_space<vmem>>, vector<1x2x32xf32>,
    %c6_i32 = arith.constant 6 : i32
    %c2_i32_51 = arith.constant 2 : i32
    %169 = arith.muli %c6_i32, %c2_i32_51 : i32
    %170 = tpu.assume_multiple %169, 2 : i32
    %171 = arith.index_cast %170 : i32 to index
    %c0_52 = arith.constant 0 : index
    %172 = vector.load %arg9[%171, %c0_52] : memref<16x128xf32, #tpu.memory_space<vmem>>, vector<2x128xf32>
    %cst_53 = arith.constant dense<0.000000e+00> : vector<2x128xf32>
    %173 = tpu.matmul %164, %10, %cst_53 {dimension_numbers = #tpu.dot_dimension_numbers<[1], [0], [0], [1], [0, 0, 1, 1], [], []>} : vector<2x32xf32>, vector<32x128xf32>, vector<2x128xf32> -> vector<2x128xf32>
    %174 = arith.addf %172, %173 : vector<2x128xf32>
    %175 = vector.extract_strided_slice %174 {offsets = [0, 0], sizes = [2, 96], strides = [1, 1]} : vector<2x128xf32> to vector<2x96xf32>
    %176 = arith.negf %175 : vector<2x96xf32>
    %177 = math.exp %176 : vector<2x96xf32>
    %cst_54 = arith.constant 1.000000e+00 : f32
    %178 = vector.broadcast %cst_54 : f32 to vector<2x96xf32>
    %179 = arith.addf %178, %177 : vector<2x96xf32>
    %180 = arith.divf %178, %179 : vector<2x96xf32>
    %181 = vector.extract_strided_slice %180 {offsets = [0, 0], sizes = [2, 32], strides = [1, 1]} : vector<2x96xf32> to vector<2x32xf32>
    %182 = vector.extract_strided_slice %180 {offsets = [0, 32], sizes = [2, 32], strides = [1, 1]} : vector<2x96xf32> to vector<2x32xf32>
    %183 = vector.extract_strided_slice %180 {offsets = [0, 64], sizes = [2, 32], strides = [1, 1]} : vector<2x96xf32> to vector<2x32xf32>
    %184 = vector.extract_strided_slice %174 {offsets = [0, 96], sizes = [2, 32], strides = [1, 1]} : vector<2x128xf32> to vector<2x32xf32>
    %185 = math.tanh %184 : vector<2x32xf32>
    %186 = arith.mulf %182, %162 : vector<2x32xf32>
    %187 = arith.mulf %181, %185 : vector<2x32xf32>
    %188 = arith.addf %186, %187 : vector<2x32xf32>
    %189 = math.tanh %188 : vector<2x32xf32>
    %190 = arith.mulf %183, %189 : vector<2x32xf32>
    %191 = arith.index_cast %c6_i32 : i32 to index
    %c0_55 = arith.constant 0 : index
    %c0_56 = arith.constant 0 : index
    %192 = vector.load %arg5[%191, %c0_55, %c0_56] : memref<8x2x32xf32, #tpu.memory_space<vmem>>, vector<1x2x32xf32>
    %193 = vector.shape_cast %192 : vector<1x2x32xf32> to vector<2x32xf32>
    %194 = vector.shape_cast %190 : vector<2x32xf32> to vector<1x2x32xf32>
    tpu.vector_store %arg5[%191, %c0_55, %c0_56], %194 {strides = array<i32>} : memref<8x2x32xf32, #tpu.memory_space<vmem>>, vector<1x2x32xf32>,
    %c7_i32 = arith.constant 7 : i32
    %c2_i32_57 = arith.constant 2 : i32
    %195 = arith.muli %c7_i32, %c2_i32_57 : i32
    %196 = tpu.assume_multiple %195, 2 : i32
    %197 = arith.index_cast %196 : i32 to index
    %c0_58 = arith.constant 0 : index
    %198 = vector.load %arg9[%197, %c0_58] : memref<16x128xf32, #tpu.memory_space<vmem>>, vector<2x128xf32>
    %cst_59 = arith.constant dense<0.000000e+00> : vector<2x128xf32>
    %199 = tpu.matmul %190, %10, %cst_59 {dimension_numbers = #tpu.dot_dimension_numbers<[1], [0], [0], [1], [0, 0, 1, 1], [], []>} : vector<2x32xf32>, vector<32x128xf32>, vector<2x128xf32> -> vector<2x128xf32>
    %200 = arith.addf %198, %199 : vector<2x128xf32>
    %201 = vector.extract_strided_slice %200 {offsets = [0, 0], sizes = [2, 96], strides = [1, 1]} : vector<2x128xf32> to vector<2x96xf32>
    %202 = arith.negf %201 : vector<2x96xf32>
    %203 = math.exp %202 : vector<2x96xf32>
    %cst_60 = arith.constant 1.000000e+00 : f32
    %204 = vector.broadcast %cst_60 : f32 to vector<2x96xf32>
    %205 = arith.addf %204, %203 : vector<2x96xf32>
    %206 = arith.divf %204, %205 : vector<2x96xf32>
    %207 = vector.extract_strided_slice %206 {offsets = [0, 0], sizes = [2, 32], strides = [1, 1]} : vector<2x96xf32> to vector<2x32xf32>
    %208 = vector.extract_strided_slice %206 {offsets = [0, 32], sizes = [2, 32], strides = [1, 1]} : vector<2x96xf32> to vector<2x32xf32>
    %209 = vector.extract_strided_slice %206 {offsets = [0, 64], sizes = [2, 32], strides = [1, 1]} : vector<2x96xf32> to vector<2x32xf32>
    %210 = vector.extract_strided_slice %200 {offsets = [0, 96], sizes = [2, 32], strides = [1, 1]} : vector<2x128xf32> to vector<2x32xf32>
    %211 = math.tanh %210 : vector<2x32xf32>
    %212 = arith.mulf %208, %188 : vector<2x32xf32>
    %213 = arith.mulf %207, %211 : vector<2x32xf32>
    %214 = arith.addf %212, %213 : vector<2x32xf32>
    %215 = math.tanh %214 : vector<2x32xf32>
    %216 = arith.mulf %209, %215 : vector<2x32xf32>
    %217 = arith.index_cast %c7_i32 : i32 to index
    %c0_61 = arith.constant 0 : index
    %c0_62 = arith.constant 0 : index
    %218 = vector.load %arg5[%217, %c0_61, %c0_62] : memref<8x2x32xf32, #tpu.memory_space<vmem>>, vector<1x2x32xf32>
    %219 = vector.shape_cast %218 : vector<1x2x32xf32> to vector<2x32xf32>
    %220 = vector.shape_cast %216 : vector<2x32xf32> to vector<1x2x32xf32>
    tpu.vector_store %arg5[%217, %c0_61, %c0_62], %220 {strides = array<i32>} : memref<8x2x32xf32, #tpu.memory_space<vmem>>, vector<1x2x32xf32>,
    %c8_i32 = arith.constant 8 : i32
    %c0_63 = arith.constant 0 : index
    %c0_64 = arith.constant 0 : index
    %221 = vector.load %arg10[%c0_63, %c0_64] : memref<2x32xf32, #tpu.memory_space<vmem>>, vector<2x32xf32>
    tpu.vector_store %arg10[%c0_63, %c0_64], %216 {strides = array<i32>} : memref<2x32xf32, #tpu.memory_space<vmem>>, vector<2x32xf32>,
    %c0_65 = arith.constant 0 : index
    %c0_66 = arith.constant 0 : index
    %222 = vector.load %arg11[%c0_65, %c0_66] : memref<2x32xf32, #tpu.memory_space<vmem>>, vector<2x32xf32>
    tpu.vector_store %arg11[%c0_65, %c0_66], %214 {strides = array<i32>} : memref<2x32xf32, #tpu.memory_space<vmem>>, vector<2x32xf32>,
    %c0_67 = arith.constant 0 : index
    %c0_68 = arith.constant 0 : index
    %223 = vector.load %arg6[%c0_67, %c0_68] : memref<2x32xf32, #tpu.memory_space<vmem>>, vector<2x32xf32>
    tpu.vector_store %arg6[%c0_67, %c0_68], %214 {strides = array<i32>} : memref<2x32xf32, #tpu.memory_space<vmem>>, vector<2x32xf32>,
    return
  }
  func.func @transform_0(%arg0: i32) -> (i32, i32) {
    %c0_i32 = arith.constant 0 : i32
    %c0_i32_0 = arith.constant 0 : i32
    return %arg0, %c0_i32 : i32, i32
  }
  func.func @transform_1(%arg0: i32) -> (i32, i32) {
    %c0_i32 = arith.constant 0 : i32
    %c0_i32_0 = arith.constant 0 : i32
    %c0_i32_1 = arith.constant 0 : i32
    return %c0_i32, %c0_i32_0 : i32, i32
  }
  func.func @transform_4(%arg0: i32) -> (i32, i32, i32) {
    %c0_i32 = arith.constant 0 : i32
    %c0_i32_0 = arith.constant 0 : i32
    %c0_i32_1 = arith.constant 0 : i32
    return %arg0, %c0_i32, %c0_i32_0 : i32, i32, i32
  }
  func.func @transform_5(%arg0: i32) -> (i32, i32) {
    %c0_i32 = arith.constant 0 : i32
    %c0_i32_0 = arith.constant 0 : i32
    %c0_i32_1 = arith.constant 0 : i32
    return %c0_i32, %c0_i32_0 : i32, i32
  }
}

</mosaic_0001>

<bundles_post_ra>
// kernel: base_rnn_forward.1
= control target key start
LH: loop header
LB: loop body
LE: loop exit
PB: predicated region body
PF: predicated region fallthrough
CT: control target
= control target key end

     0   :  { %11 = vsyncpa [#allocation9], 0  ;;  %s1648_s0 = inlined_call_operand.vmem [shape: f32[16,16], index: 0, kind: input, shape index: {}]   ;;  %s1649_s1 = inlined_call_operand.vmem [shape: f32[1,128], index: 1, kind: input, shape index: {}]   ;;  %s1650_s2 = inlined_call_operand.vmem [shape: f32[16,128], index: 2, kind: input, shape index: {}]   ;;  %s1651_s3 = inlined_call_operand.vmem [shape: f32[32,128], index: 3, kind: input, shape index: {}]   ;;  %s1652_s4 = inlined_call_operand.vmem [shape: f32[8,2,32], index: 4, kind: output, shape index: {0}]   ;;  %s1653_s5 = inlined_call_operand.hbm [shape: f32[2,32], index: 5, kind: output, shape index: {1}]  }
   0x1   :  { %v52_v0 = vld [vmem:[%s1650_s2] sm:$0xff]  ;;  %v54_v1 = vld [vmem:[%s1650_s2 + $0x8] sm:$0xff] }
   0x2   :  { %63 = vsyncadd [#allocation7], 256  ;;  %v97_v2 = vld [vmem:[%s1651_s3] sm:$0xff]  ;;  %v99_v3 = vld [vmem:[%s1651_s3 + $0x8] sm:$0xff] }
   0x3   :  { %v101_v4 = vld [vmem:[%s1651_s3 + $0x10] sm:$0xff]  ;;  %v103_v5 = vld [vmem:[%s1651_s3 + $0x18] sm:$0xff] }
   0x4   :  { %112 = vsyncadd [#allocation7 + $0x1], 512  ;;  %vm113_vm0 = vcmask 254976   ;;  %v1440_v6 = vmov 0.0  }
   0x5   :  { %114 = vst.msk [vmem:[#allocation5] sm:$0x3] %vm113_vm0, %v1440_v6  ;;  %115 = vst.msk [vmem:[#allocation6] sm:$0x3] %vm113_vm0, %v1440_v6 }
   0x6   :  { %1434 = dma.done.wait [#allocation7], 256 }
   0x7   :  { %1435 = vsyncadd [#allocation7], 4294967040 }
   0x8   :  { %1436 = dma.done.wait [#allocation7 + $0x1], 512 }
   0x9   :  { %1437 = vsyncadd [#allocation7 + $0x1], 4294966784  ;;  %v1289_v7 = vpack.c.bf16 %v54_v1, %v52_v0  ;;  %v1499_v8 = vpack.c.bf16 %v99_v3, %v97_v2  ;;  %v1441_v9 = vmov 0.0|0.0   ;;  %v1503_v10 = vpack.c.bf16 %v103_v5, %v101_v4  ;;  %v122_v11 = vld [vmem:[%s1648_s0] sm:$0xff]  ;;  %v123_v12 = vld [vmem:[%s1648_s0 + $0x8] sm:$0xff]  ;;  %s1443_s8 = smov 32  }
   0xa   :  { %1293 = vmatprep.subr.bf16.mxu1 %v1441_v9  ;;  %vm1442_vm1 = vmmov 0   ;;  %vm133_vm2 = vcmask 130048   ;;  %vm224_vm3 = vcmask 261120   ;;  %v1122_v14 = vld [vmem:[%s1649_s1] ss:$0 sm:$0xff]  ;;  %s1444_s1 = smov 64  }
   0xb   :  { %1290 = vmatprep.subr.bf16.mxu0 %v1289_v7  ;;  %1295 = vmatpush3.bf16.msra.mxu1 %v1499_v8  ;;  %s1445_s23 = smov 96   ;;  %s1446_s24 = smov [#allocation8]  }
   0xc   :  { %1292 = vmatpush3.bf16.msra.mxu0 %v1289_v7  ;;  %1296 = vmatprep.subr.bf16.mxu1 %v1441_v9  ;;  %v221_v13 = vld [vmem:[#allocation5] sm:$0x3]  ;;  %v222_v24 = vld [vmem:[#allocation6] sm:$0x3]  ;;  %s1083_s25 = sshll.u32 %s1446_s24, 4  ;;  %s1084_s25 = int_to_ptr.vmem [resolvable:$true] %s1083_s25 }
   0xd   :  { %1209 = vmatprep.mubr.msk.f32.mxu1 %vm1442_vm1, %v1440_v6  ;;  %1299 = vmatprep.subr.bf16.mxu0 %v1441_v9  ;;  %s1412_s26 = scalar_lea.vmem %s1084_s25, 32  ;;  %p1417_p1 = scmp.lt.s32.totalorder %s1084_s25, %s1084_s25 }
   0xe   :  { %1198 = vmatprep.mubr.msk.f32.mxu0 %vm133_vm2, %v122_v11  ;;  %p1413_p0 = scmp.ne.s32.totalorder %s1084_s25, %s1412_s26  ;;  %p1418_p2 = scmp.lt.s32.totalorder %s1412_s26, %s1412_s26 }
   0xf   :  { %1298 = vmatpush3.bf16.msra.mxu1 %v1503_v10  ;;  %1199 = vmatmul.mubr.msk.f32.vlgmr.msra.gmra.mrb[0].mxu0 %vm133_vm2, %v123_v12 }
  0x10   :  { %1305 = vmatprep.subr.bf16.mxu1 %v1441_v9  ;;  %1301 = vmatpush3.bf16.msra.mxu0 %v1499_v8  ;;  %p1419_p3 = por %p1418_p2, %p1417_p1 }
  0x11   :  { %1220 = vmatprep.mubr.msk.f32.mxu0 %vm1442_vm1, %v1440_v6  ;;  %1302 = vmatprep.subr.bf16.mxu0 %v1441_v9 }
  0x12   :  { %1210 = vmatmul.mubr.msk.f32.vlgmr.msra.gmra.mrb[0].mxu1 %vm224_vm3, %v221_v13  ;;  %p1420_p4 = pnand %p1419_p3, %p1413_p0 }
  0x13   :  { %1307 = vmatpush3.bf16.msra.mxu1 %v1499_v8  ;;  %1231 = vmatprep.mubr.msk.f32.mxu1 %vm1442_vm1, %v1440_v6 }
  0x14   :  { %1308 = vmatprep.subr.bf16.mxu1 %v1441_v9  ;;  %1304 = vmatpush3.bf16.msra.mxu0 %v1503_v10 }
  0x15   :  { %1311 = vmatprep.subr.bf16.mxu0 %v1441_v9 }
  0x17   :  { %1310 = vmatpush3.bf16.msra.mxu1 %v1503_v10 }
  0x18   :  { %1317 = vmatprep.subr.bf16.mxu1 %v1441_v9 }
  0xe2   :  { %v1200_v15 = vpop.f32.mrb[0].mxu0 }
  0xe3   :  { %v212_v17 = vadd.f32 %v1200_v15, %v1122_v14  ;;  %v206_v18 = vpop.f32.mrb[1].mxu0 }
  0xe4   :  { %v207_v20 = vadd.f32 %v1122_v14, %v206_v18 }
  0xe5   :  { %v294_v16 = vpop.f32.mrb[0].mxu1  ;;  %216 = vst [vmem:[#allocation4 + $0x8] sm:$0xff] %v212_v17 }
  0xe6   :  { %v1211_v19 = vpop.f32.mrb[1].mxu1  ;;  %215 = vst [vmem:[#allocation4] sm:$0xff] %v207_v20 }
  0xed   :  { %v223_v21 = vld [vmem:[#allocation4] sm:$0x3]  ;;  %v334_v39 = vld [vmem:[#allocation4 + $0x2] sm:$0x3]  ;;  %v439_v57 = vld [vmem:[#allocation4 + $0x4] sm:$0x3] }
  0xee   :  { %v298_v22 = vadd.f32 %v294_v16, %v223_v21  ;;  %v544_v15 = vld [vmem:[#allocation4 + $0x6] sm:$0x3] }
  0xf0   :  { %1348 = vtanh.f32 %v298_v22  ;;  %v1126_v25 = vmul.f32 -1.442695, %v298_v22 }
  0xf2   :  { %1350 = vpow2.f32 %v1126_v25 }
  0xfa   :  { %v1349_v23 = vpop.eup %1348 }
  0xfb   :  { %312 = vrot.lane.b32.xlu0 %v1349_v23, %s1443_s8 }
  0xfc   :  { %v1351_v26 = vpop.eup %1350 }
  0xfd   :  { %v302_v27 = vadd.f32 1.0, %v1351_v26 }
  0xff   :  { %307 = vrot.lane.b32.xlu0 %v222_v24, %s1443_s8  ;;  %1352 = vrcp.f32 %v302_v27 }
 0x109   :  { %v1353_v28 = vpop.eup %1352 }
 0x16d   :  { %v313_v29 = vpop.permute.xlu0 %312 }
 0x16e   :  { %v315_v30 = vmul.f32 %v1353_v28, %v313_v29 }
 0x170   :  { %317 = vrot.lane.b32.xlu1 %v315_v30, %s1443_s8 }
 0x171   :  { %v308_v31 = vpop.permute.xlu0 %307 }
 0x172   :  { %v310_v32 = vmul.f32 %v1353_v28, %v308_v31 }
 0x1e2   :  { %v318_v33 = vpop.permute.xlu1 %317 }
 0x1e3   :  { %v320_v34 = vadd.f32 %v318_v33, %v310_v32  ;;  %v649_v33 = vld [vmem:[#allocation4 + $0x8] sm:$0x3] }
 0x1e5   :  { %1354 = vtanh.f32 %v320_v34 }
 0x1ef   :  { %v1355_v35 = vpop.eup %1354 }
 0x1f0   :  { %323 = vrot.lane.b32.xlu1 %v1355_v35, %s1443_s8 }
 0x262   :  { %v324_v36 = vpop.permute.xlu1 %323 }
 0x263   :  { %v326_v37 = vmul.f32 %v1353_v28, %v324_v36 }
 0x265   :  { %328 = vrot.lane.b32.xlu0 %v326_v37, %s1444_s1 }
 0x2d7   :  { %v329_v38 = vpop.permute.xlu0 %328 }
 0x2d8   :  { %332 = vst.msk [vmem:[%s1652_s4] sm:$0x3] %vm113_vm0, %v329_v38  ;;  %1221 = vmatmul.mubr.msk.f32.vlgmr.msra.gmra.mrb[2].mxu0 %vm224_vm3, %v329_v38 }
 0x2d9   :  { %1313 = vmatpush3.bf16.msra.mxu0 %v1499_v8  ;;  %1242 = vmatprep.mubr.msk.f32.mxu0 %vm1442_vm1, %v1440_v6 }
 0x2da   :  { %1314 = vmatprep.subr.bf16.mxu0 %v1441_v9 }
 0x2dd   :  { %1316 = vmatpush3.bf16.msra.mxu0 %v1503_v10 }
 0x2de   :  { %1323 = vmatprep.subr.bf16.mxu0 %v1441_v9 }
 0x3ab   :  { %v403_v40 = vpop.f32.mrb[2].mxu0 }
 0x3ac   :  { %v407_v41 = vadd.f32 %v403_v40, %v334_v39  ;;  %v1222_v42 = vpop.f32.mrb[3].mxu0 }
 0x3ae   :  { %1356 = vtanh.f32 %v407_v41  ;;  %v1128_v44 = vmul.f32 -1.442695, %v407_v41 }
 0x3b0   :  { %1358 = vpow2.f32 %v1128_v44 }
 0x3b8   :  { %v1357_v43 = vpop.eup %1356 }
 0x3b9   :  { %417 = vrot.lane.b32.xlu1 %v1357_v43, %s1443_s8 }
 0x3ba   :  { %v1359_v45 = vpop.eup %1358 }
 0x3bb   :  { %v411_v46 = vadd.f32 1.0, %v1359_v45 }
 0x3bd   :  { %1360 = vrcp.f32 %v411_v46 }
 0x3c7   :  { %v1361_v47 = vpop.eup %1360 }
 0x3c8   :  { %v415_v50 = vmul.f32 %v1361_v47, %v320_v34 }
 0x42b   :  { %v418_v48 = vpop.permute.xlu1 %417 }
 0x42c   :  { %v420_v49 = vmul.f32 %v1361_v47, %v418_v48 }
 0x42e   :  { %422 = vrot.lane.b32.xlu0 %v420_v49, %s1443_s8 }
 0x4a0   :  { %v423_v51 = vpop.permute.xlu0 %422 }
 0x4a1   :  { %v425_v52 = vadd.f32 %v423_v51, %v415_v50  ;;  %v754_v51 = vld [vmem:[#allocation4 + $0xa] sm:$0x3] }
 0x4a3   :  { %1362 = vtanh.f32 %v425_v52 }
 0x4ad   :  { %v1363_v53 = vpop.eup %1362 }
 0x4ae   :  { %428 = vrot.lane.b32.xlu1 %v1363_v53, %s1443_s8 }
 0x520   :  { %v429_v54 = vpop.permute.xlu1 %428 }
 0x521   :  { %v431_v55 = vmul.f32 %v1361_v47, %v429_v54 }
 0x523   :  { %433 = vrot.lane.b32.xlu0 %v431_v55, %s1444_s1 }
 0x595   :  { %v434_v56 = vpop.permute.xlu0 %433 }
 0x596   :  { %1129 = vst.msk [vmem:[%s1652_s4 + $0x2] sm:$0x3] %vm113_vm0, %v434_v56  ;;  %1232 = vmatmul.mubr.msk.f32.vlgmr.msra.gmra.mrb[2].mxu1 %vm224_vm3, %v434_v56 }
 0x597   :  { %1319 = vmatpush3.bf16.msra.mxu1 %v1499_v8  ;;  %1253 = vmatprep.mubr.msk.f32.mxu1 %vm1442_vm1, %v1440_v6 }
 0x598   :  { %1320 = vmatprep.subr.bf16.mxu1 %v1441_v9 }
 0x59b   :  { %1322 = vmatpush3.bf16.msra.mxu1 %v1503_v10 }
 0x59c   :  { %1329 = vmatprep.subr.bf16.mxu1 %v1441_v9 }
 0x669   :  { %v508_v58 = vpop.f32.mrb[2].mxu1 }
 0x66a   :  { %v512_v59 = vadd.f32 %v508_v58, %v439_v57  ;;  %v1233_v60 = vpop.f32.mrb[3].mxu1 }
 0x66c   :  { %1364 = vtanh.f32 %v512_v59  ;;  %v1131_v62 = vmul.f32 -1.442695, %v512_v59 }
 0x66e   :  { %1366 = vpow2.f32 %v1131_v62 }
 0x676   :  { %v1365_v61 = vpop.eup %1364 }
 0x677   :  { %522 = vrot.lane.b32.xlu1 %v1365_v61, %s1443_s8 }
 0x678   :  { %v1367_v63 = vpop.eup %1366 }
 0x679   :  { %v516_v0 = vadd.f32 1.0, %v1367_v63 }
 0x67b   :  { %1368 = vrcp.f32 %v516_v0 }
 0x685   :  { %v1369_v1 = vpop.eup %1368 }
 0x686   :  { %v520_v4 = vmul.f32 %v1369_v1, %v425_v52 }
 0x6e9   :  { %v523_v2 = vpop.permute.xlu1 %522 }
 0x6ea   :  { %v525_v3 = vmul.f32 %v1369_v1, %v523_v2 }
 0x6ec   :  { %527 = vrot.lane.b32.xlu0 %v525_v3, %s1443_s8 }
 0x75e   :  { %v528_v5 = vpop.permute.xlu0 %527 }
 0x75f   :  { %v530_v7 = vadd.f32 %v528_v5, %v520_v4 }
 0x761   :  { %1370 = vtanh.f32 %v530_v7 }
 0x76b   :  { %v1371_v11 = vpop.eup %1370 }
 0x76c   :  { %533 = vrot.lane.b32.xlu1 %v1371_v11, %s1443_s8 }
 0x7de   :  { %v534_v12 = vpop.permute.xlu1 %533 }
 0x7df   :  { %v536_v13 = vmul.f32 %v1369_v1, %v534_v12  ;;  %v859_v1 = vld [vmem:[#allocation4 + $0xc] sm:$0x3] }
 0x7e1   :  { %538 = vrot.lane.b32.xlu0 %v536_v13, %s1444_s1 }
 0x853   :  { %v539_v14 = vpop.permute.xlu0 %538 }
 0x854   :  { %1132 = vst.msk [vmem:[%s1652_s4 + $0x4] sm:$0x3] %vm113_vm0, %v539_v14  ;;  %1243 = vmatmul.mubr.msk.f32.vlgmr.msra.gmra.mrb[4].mxu0 %vm224_vm3, %v539_v14 }
 0x855   :  { %1325 = vmatpush3.bf16.msra.mxu0 %v1499_v8  ;;  %1264 = vmatprep.mubr.msk.f32.mxu0 %vm1442_vm1, %v1440_v6 }
 0x856   :  { %1326 = vmatprep.subr.bf16.mxu0 %v1441_v9 }
 0x859   :  { %1328 = vmatpush3.bf16.msra.mxu0 %v1503_v10 }
 0x85a   :  { %1335 = vmatprep.subr.bf16.mxu0 %v1441_v9 }
 0x927   :  { %v613_v16 = vpop.f32.mrb[4].mxu0 }
 0x928   :  { %v617_v17 = vadd.f32 %v613_v16, %v544_v15  ;;  %v1244_v18 = vpop.f32.mrb[5].mxu0 }
 0x92a   :  { %1372 = vtanh.f32 %v617_v17  ;;  %v1134_v20 = vmul.f32 -1.442695, %v617_v17 }
 0x92c   :  { %1374 = vpow2.f32 %v1134_v20 }
 0x934   :  { %v1373_v19 = vpop.eup %1372 }
 0x935   :  { %627 = vrot.lane.b32.xlu1 %v1373_v19, %s1443_s8 }
 0x936   :  { %v1375_v21 = vpop.eup %1374 }
 0x937   :  { %v621_v22 = vadd.f32 1.0, %v1375_v21 }
 0x939   :  { %1376 = vrcp.f32 %v621_v22 }
 0x943   :  { %v1377_v23 = vpop.eup %1376 }
 0x944   :  { %v625_v26 = vmul.f32 %v1377_v23, %v530_v7 }
 0x9a7   :  { %v628_v24 = vpop.permute.xlu1 %627 }
 0x9a8   :  { %v630_v25 = vmul.f32 %v1377_v23, %v628_v24 }
 0x9aa   :  { %632 = vrot.lane.b32.xlu0 %v630_v25, %s1443_s8 }
 0xa1c   :  { %v633_v27 = vpop.permute.xlu0 %632 }
 0xa1d   :  { %v635_v28 = vadd.f32 %v633_v27, %v625_v26 }
 0xa1f   :  { %1378 = vtanh.f32 %v635_v28 }
 0xa29   :  { %v1379_v29 = vpop.eup %1378 }
 0xa2a   :  { %638 = vrot.lane.b32.xlu1 %v1379_v29, %s1443_s8 }
 0xa9c   :  { %v639_v30 = vpop.permute.xlu1 %638 }
 0xa9d   :  { %v641_v31 = vmul.f32 %v1377_v23, %v639_v30  ;;  %v964_v23 = vld [vmem:[#allocation4 + $0xe] sm:$0x3] }
 0xa9f   :  { %643 = vrot.lane.b32.xlu0 %v641_v31, %s1444_s1 }
 0xb11   :  { %v644_v32 = vpop.permute.xlu0 %643 }
 0xb12   :  { %1135 = vst.msk [vmem:[%s1652_s4 + $0x6] sm:$0x3] %vm113_vm0, %v644_v32  ;;  %1254 = vmatmul.mubr.msk.f32.vlgmr.msra.gmra.mrb[4].mxu1 %vm224_vm3, %v644_v32 }
 0xb13   :  { %1331 = vmatpush3.bf16.msra.mxu1 %v1499_v8  ;;  %1275 = vmatprep.mubr.msk.f32.mxu1 %vm1442_vm1, %v1440_v6 }
 0xb14   :  { %1332 = vmatprep.subr.bf16.mxu1 %v1441_v9 }
 0xb17   :  { %1334 = vmatpush3.bf16.msra.mxu1 %v1503_v10 }
 0xbe5   :  { %v718_v34 = vpop.f32.mrb[4].mxu1 }
 0xbe6   :  { %v722_v35 = vadd.f32 %v718_v34, %v649_v33  ;;  %v1255_v36 = vpop.f32.mrb[5].mxu1 }
 0xbe8   :  { %1380 = vtanh.f32 %v722_v35  ;;  %v1137_v38 = vmul.f32 -1.442695, %v722_v35 }
 0xbea   :  { %1382 = vpow2.f32 %v1137_v38 }
 0xbf2   :  { %v1381_v37 = vpop.eup %1380 }
 0xbf3   :  { %732 = vrot.lane.b32.xlu1 %v1381_v37, %s1443_s8 }
 0xbf4   :  { %v1383_v39 = vpop.eup %1382 }
 0xbf5   :  { %v726_v40 = vadd.f32 1.0, %v1383_v39 }
 0xbf7   :  { %1384 = vrcp.f32 %v726_v40 }
 0xc01   :  { %v1385_v41 = vpop.eup %1384 }
 0xc02   :  { %v730_v44 = vmul.f32 %v1385_v41, %v635_v28 }
 0xc65   :  { %v733_v42 = vpop.permute.xlu1 %732 }
 0xc66   :  { %v735_v43 = vmul.f32 %v1385_v41, %v733_v42 }
 0xc68   :  { %737 = vrot.lane.b32.xlu0 %v735_v43, %s1443_s8 }
 0xcda   :  { %v738_v45 = vpop.permute.xlu0 %737 }
 0xcdb   :  { %v740_v46 = vadd.f32 %v738_v45, %v730_v44 }
 0xcdd   :  { %1386 = vtanh.f32 %v740_v46 }
 0xce7   :  { %v1387_v47 = vpop.eup %1386 }
 0xce8   :  { %743 = vrot.lane.b32.xlu1 %v1387_v47, %s1443_s8 }
 0xd5a   :  { %v744_v48 = vpop.permute.xlu1 %743 }
 0xd5b   :  { %v746_v49 = vmul.f32 %v1385_v41, %v744_v48 }
 0xd5d   :  { %748 = vrot.lane.b32.xlu0 %v746_v49, %s1444_s1 }
 0xdcf   :  { %v749_v50 = vpop.permute.xlu0 %748 }
 0xdd0   :  { %1138 = vst.msk [vmem:[%s1652_s4 + $0x8] sm:$0x3] %vm113_vm0, %v749_v50  ;;  %1265 = vmatmul.mubr.msk.f32.vlgmr.msra.gmra.mrb[6].mxu0 %vm224_vm3, %v749_v50 }
 0xdd1   :  { %1337 = vmatpush3.bf16.msra.mxu0 %v1499_v8  ;;  %1286 = vmatprep.mubr.msk.f32.mxu0 %vm1442_vm1, %v1440_v6 }
 0xdd2   :  { %1338 = vmatprep.subr.bf16.mxu0 %v1441_v9 }
 0xdd5   :  { %1340 = vmatpush3.bf16.msra.mxu0 %v1503_v10 }
 0xea3   :  { %v823_v52 = vpop.f32.mrb[6].mxu0 }
 0xea4   :  { %v827_v53 = vadd.f32 %v823_v52, %v754_v51  ;;  %v1266_v54 = vpop.f32.mrb[7].mxu0 }
 0xea6   :  { %1388 = vtanh.f32 %v827_v53  ;;  %v1140_v56 = vmul.f32 -1.442695, %v827_v53 }
 0xea8   :  { %1390 = vpow2.f32 %v1140_v56 }
 0xeb0   :  { %v1389_v55 = vpop.eup %1388 }
 0xeb1   :  { %837 = vrot.lane.b32.xlu1 %v1389_v55, %s1443_s8 }
 0xeb2   :  { %v1391_v57 = vpop.eup %1390 }
 0xeb3   :  { %v831_v58 = vadd.f32 1.0, %v1391_v57 }
 0xeb5   :  { %1392 = vrcp.f32 %v831_v58 }
 0xebf   :  { %v1393_v8 = vpop.eup %1392 }
 0xec0   :  { %v835_v9 = vmul.f32 %v1393_v8, %v740_v46 }
 0xf23   :  { %v838_v59 = vpop.permute.xlu1 %837 }
 0xf24   :  { %v840_v6 = vmul.f32 %v1393_v8, %v838_v59 }
 0xf26   :  { %842 = vrot.lane.b32.xlu0 %v840_v6, %s1443_s8 }
 0xf98   :  { %v843_v10 = vpop.permute.xlu0 %842 }
 0xf99   :  { %v845_v60 = vadd.f32 %v843_v10, %v835_v9 }
 0xf9b   :  { %1394 = vtanh.f32 %v845_v60 }
 0xfa5   :  { %v1395_v61 = vpop.eup %1394 }
 0xfa6   :  { %848 = vrot.lane.b32.xlu1 %v1395_v61, %s1443_s8 }
0x1018   :  { %v849_v62 = vpop.permute.xlu1 %848 }
0x1019   :  { %v851_v63 = vmul.f32 %v1393_v8, %v849_v62 }
0x101b   :  { %853 = vrot.lane.b32.xlu0 %v851_v63, %s1444_s1 }
0x108d   :  { %v854_v0 = vpop.permute.xlu0 %853 }
0x108e   :  { %1141 = vst.msk [vmem:[%s1652_s4 + $0xa] sm:$0x3] %vm113_vm0, %v854_v0  ;;  %1276 = vmatmul.mubr.msk.f32.vlgmr.msra.gmra.mrb[6].mxu1 %vm224_vm3, %v854_v0 }
0x1161   :  { %v928_v2 = vpop.f32.mrb[6].mxu1 }
0x1162   :  { %v932_v3 = vadd.f32 %v928_v2, %v859_v1  ;;  %v1277_v4 = vpop.f32.mrb[7].mxu1 }
0x1164   :  { %1396 = vtanh.f32 %v932_v3  ;;  %v1143_v7 = vmul.f32 -1.442695, %v932_v3 }
0x1166   :  { %1398 = vpow2.f32 %v1143_v7 }
0x116e   :  { %v1397_v5 = vpop.eup %1396 }
0x116f   :  { %942 = vrot.lane.b32.xlu1 %v1397_v5, %s1443_s8 }
0x1170   :  { %v1399_v11 = vpop.eup %1398 }
0x1171   :  { %v936_v12 = vadd.f32 1.0, %v1399_v11 }
0x1173   :  { %1400 = vrcp.f32 %v936_v12 }
0x117d   :  { %v1401_v13 = vpop.eup %1400 }
0x117e   :  { %v940_v16 = vmul.f32 %v1401_v13, %v845_v60 }
0x11e1   :  { %v943_v14 = vpop.permute.xlu1 %942 }
0x11e2   :  { %v945_v15 = vmul.f32 %v1401_v13, %v943_v14 }
0x11e4   :  { %947 = vrot.lane.b32.xlu0 %v945_v15, %s1443_s8 }
0x1256   :  { %v948_v17 = vpop.permute.xlu0 %947 }
0x1257   :  { %v950_v18 = vadd.f32 %v948_v17, %v940_v16 }
0x1259   :  { %1402 = vtanh.f32 %v950_v18 }
0x1263   :  { %v1403_v19 = vpop.eup %1402 }
0x1264   :  { %953 = vrot.lane.b32.xlu1 %v1403_v19, %s1443_s8 }
0x12d6   :  { %v954_v20 = vpop.permute.xlu1 %953 }
0x12d7   :  { %v956_v21 = vmul.f32 %v1401_v13, %v954_v20 }
0x12d9   :  { %958 = vrot.lane.b32.xlu0 %v956_v21, %s1444_s1 }
0x134b   :  { %v959_v22 = vpop.permute.xlu0 %958 }
0x134c   :  { %1144 = vst.msk [vmem:[%s1652_s4 + $0xc] sm:$0x3] %vm113_vm0, %v959_v22  ;;  %1287 = vmatmul.mubr.msk.f32.vlgmr.msra.gmra.mrb[8].mxu0 %vm224_vm3, %v959_v22 }
0x141f   :  { %v1033_v24 = vpop.f32.mrb[8].mxu0 }
0x1420   :  { %v1037_v25 = vadd.f32 %v1033_v24, %v964_v23  ;;  %v1288_v26 = vpop.f32.mrb[9].mxu0 }
0x1422   :  { %1404 = vtanh.f32 %v1037_v25  ;;  %v1146_v28 = vmul.f32 -1.442695, %v1037_v25 }
0x1424   :  { %1406 = vpow2.f32 %v1146_v28 }
0x142c   :  { %v1405_v27 = vpop.eup %1404 }
0x142d   :  { %1047 = vrot.lane.b32.xlu1 %v1405_v27, %s1443_s8 }
0x142e   :  { %v1407_v29 = vpop.eup %1406 }
0x142f   :  { %v1041_v30 = vadd.f32 1.0, %v1407_v29 }
0x1431   :  { %1408 = vrcp.f32 %v1041_v30 }
0x143b   :  { %v1409_v31 = vpop.eup %1408 }
0x143c   :  { %v1045_v34 = vmul.f32 %v1409_v31, %v950_v18 }
0x149f   :  { %v1048_v32 = vpop.permute.xlu1 %1047 }
0x14a0   :  { %v1050_v33 = vmul.f32 %v1409_v31, %v1048_v32 }
0x14a2   :  { %1052 = vrot.lane.b32.xlu0 %v1050_v33, %s1443_s8 }
0x1514   :  { %v1053_v35 = vpop.permute.xlu0 %1052 }
0x1515   :  { %v1055_v36 = vadd.f32 %v1053_v35, %v1045_v34 }
0x1517   :  { %1410 = vtanh.f32 %v1055_v36  ;;  %1070 = vrot.lane.b32.xlu0 %v1055_v36, %s1445_s23 }
0x1521   :  { %v1411_v37 = vpop.eup %1410 }
0x1522   :  { %1058 = vrot.lane.b32.xlu1 %v1411_v37, %s1443_s8 }
0x1589   :  { %v1071_v38 = vpop.permute.xlu0 %1070 }
0x158a   :  { %1073 = vst.msk [vmem:[#allocation6] sm:$0x3] %vm113_vm0, %v1071_v38  ;;  %1074 = vst.msk [vmem:[#allocation8] sm:$0x3] %vm113_vm0, %v1071_v38 }
0x158b   :  { %1423 = shalt.err (!%p1420_p4)
}
0x158c   :  { %s1424_s29 = scalar_lea.hbm %s1653_s5, 32 }
0x158d   :  { %p1425_p5 = scmp.ne.s32.totalorder %s1653_s5, %s1424_s29  ;;  %p1428_p6 = scmp.lt.u32.totalorder %s1424_s29, %s1653_s5 }
0x158f   :  { %p1430_p7 = pnand %p1428_p6, %p1425_p5 }
0x1591   :  { %1433 = shalt.err (!%p1430_p7)
}
0x1592   :  { %1086 = dma.vmem_to_hbm [thread:$0]  %s1084_s25, 32, %s1653_s5, [#allocation9]  }
0x1594   :  { %v1059_v39 = vpop.permute.xlu1 %1058 }
0x1595   :  { %v1061_v40 = vmul.f32 %v1409_v31, %v1059_v39 }
0x1597   :  { %1063 = vrot.lane.b32.xlu1 %v1061_v40, %s1444_s1 }
0x1609   :  { %v1064_v41 = vpop.permute.xlu1 %1063 }
0x160a   :  { %1147 = vst.msk [vmem:[%s1652_s4 + $0xe] sm:$0x3] %vm113_vm0, %v1064_v41  ;;  %1068 = vst.msk [vmem:[#allocation5] sm:$0x3] %vm113_vm0, %v1064_v41 }
0x160b   :  { %1438 = dma.done.wait [#allocation9], 32  }
0x160c   :  { %1439 = vsyncadd [#allocation9], 4294967264 }
0x160d   :  { %1092 = vsyncpa [#allocation9], 1 }
0x160e   :  { %1093 = vsyncmov [#allocation7] }
0x1611   :  { %s1094_s10 = vpop.sfrf %1093 }
0x1612   :  { %p1148_p8 = scmp.ne.s32.totalorder %s1094_s10, 0 }
0x1614   :  { %1098 = shalt.err (%p1148_p8)  }
0x1615   :  { %1100 = vsyncmov [#allocation7 + $0x1] }
0x1618   :  { %s1101_s5 = vpop.sfrf %1100 }
0x1619   :  { %p1149_p9 = scmp.ne.s32.totalorder %s1101_s5, 0 }
0x161b   :  { %1105 = shalt.err (%p1149_p9)  }

</bundles_post_ra>
